<compile_context>
chip_gen: v7x
topology: tpu7x:2x2x1
jax: 0.10.0
libtpu: 0.0.40
codegen_flags: <defaults>
</compile_context>

<pallas_src>
import functools
import math

import jax
import jax.numpy as jnp
from jax.experimental import pallas as pl
from jax.experimental.pallas import tpu as pltpu


# ---------------------------------------------------------------------------
# Kernels
# ---------------------------------------------------------------------------

def _film_rowwise_kernel(x_ref, gamma_ref, beta_ref, o_ref):
    # gamma/beta blocks are (bm, 1): native broadcast against the (bm, bn) tile.
    o_ref[...] = (gamma_ref[...] * x_ref[...] + beta_ref[...]).astype(o_ref.dtype)


def _film_grouped_kernel(x_ref, gamma_ref, beta_ref, o_ref, *, hw: int):
    # gamma/beta blocks are (bm, r); each value modulates `hw` consecutive
    # lanes of the (bm, r*hw) x tile.  Expansion is VPU/XLU work and hides
    # under the (dominant) HBM<->VMEM DMA.
    bm, r = gamma_ref.shape
    assert x_ref.shape == (bm, r * hw)
    g = jnp.broadcast_to(gamma_ref[...][:, :, None], (bm, r, hw)).reshape(bm, r * hw)
    b = jnp.broadcast_to(beta_ref[...][:, :, None], (bm, r, hw)).reshape(bm, r * hw)
    o_ref[...] = (g * x_ref[...] + b).astype(o_ref.dtype)


# ---------------------------------------------------------------------------
# Tiling / chip helpers
# ---------------------------------------------------------------------------

# Explicit scoped-VMEM request: fits v7x's 64 MiB physical (32 MiB scoped
# default) and is comfortably below v5e/v6e's 128 MiB physical VMEM.
_VMEM_LIMIT_BYTES = 32 * 1024 * 1024
# Per-tile-buffer byte budgets (x-in and out are each double-buffered, plus a
# little slack for elementwise temporaries / expanded gamma-beta in the
# grouped kernel).  Total pipelined footprint stays ~24-30 MiB.
_TILE_BUDGET_STANDARD = 5 * 1024 * 1024
_TILE_BUDGET_GROUPED = 3 * 1024 * 1024


@functools.lru_cache(maxsize=None)
def _num_tensorcores_per_chip() -> int:
    """Best-effort TensorCore count (2 on v7x-class parts, 1 on v5e/v6e)."""
    try:
        info = pltpu.get_tpu_info()
        for attr in ("num_cores", "core_count", "num_tensorcores",
                     "tensorcore_count", "cores_per_chip", "num_cores_per_chip"):
            v = getattr(info, attr, None)
            if isinstance(v, int) and v > 0:
                return v
    except Exception:
        pass
    try:
        kind = jax.devices()[0].device_kind.lower()
        if "v7" in kind:
            return 2
    except Exception:
        pass
    return 1


def _choose_tiles(M: int, N: int, itemsize: int, budget: int):
    """Byte-budgeted (bm, bn).  Lane axis first (full rows preferred), then rows."""
    bm_min = min(8, M)
    if N <= 128 or N * itemsize * bm_min <= budget:
        bn = N                                   # full rows: contiguous DMA
    else:
        bn = (budget // (bm_min * itemsize)) // 128 * 128
        bn = max(128, min(bn, (N // 128) * 128))  # 128-aligned, ragged tail masked
    bm = budget // (itemsize * max(bn, 1))
    if bm >= M:
        bm = M                                    # full extent
    else:
        bm = max(8, (bm // 8) * 8)                # 8-aligned, ragged tail masked
    return bm, bn


def _pick_group(bc: int, hw: int):
    """Smallest r with bc % r == 0 and (r*hw) % 128 == 0 (capped so the
    in-kernel lane expansion stays cheap)."""
    base = 128 // math.gcd(hw, 128)
    if 1 < base <= 32 and bc % base == 0:
        return base
    return None


# ---------------------------------------------------------------------------
# 2D driver
# ---------------------------------------------------------------------------

def _film_2d(x2, g2, b2, kernel, *, lane_split_ok: bool, tile_budget: int):
    """FiLM on a 2D view.  x2: (M, N) lane-dense.  g2/b2: (M, 1) or (M, r)."""
    M, N = x2.shape
    itemsize = jnp.dtype(x2.dtype).itemsize
    bm, bn = _choose_tiles(M, N, itemsize, tile_budget)

    # v7x: two TensorCores share HBM.  If the whole problem fits in one tile,
    # force a split along an aligned axis so both cores get work.  Single-TC
    # chips keep the single block (the extra grid step would just be overhead).
    if pl.cdiv(M, bm) == 1 and pl.cdiv(N, bn) == 1 and _num_tensorcores_per_chip() > 1:
        if lane_split_ok and N >= 256:
            bn = max(128, ((N // 2) // 128) * 128)
        elif M >= 16:
            bm = max(8, ((M // 2) // 8) * 8)

    n_m, n_n = pl.cdiv(M, bm), pl.cdiv(N, bn)
    r = g2.shape[1]

    cost = pl.CostEstimate(
        flops=2 * M * N,
        transcendentals=0,
        bytes_accessed=2 * M * N * itemsize + 2 * g2.size * jnp.dtype(g2.dtype).itemsize,
    )

    return pl.pallas_call(
        kernel,
        out_shape=jax.ShapeDtypeStruct((M, N), x2.dtype),
        grid_spec=pltpu.PrefetchScalarGridSpec(
            num_scalar_prefetch=0,
            grid=(n_m, n_n),
            in_specs=[
                pl.BlockSpec((bm, bn), lambda i, j: (i, j)),
                # gamma/beta blocks depend only on i -> reused (no re-DMA)
                # across the inner lane-axis loop.
                pl.BlockSpec((bm, r), lambda i, j: (i, 0)),
                pl.BlockSpec((bm, r), lambda i, j: (i, 0)),
            ],
            out_specs=pl.BlockSpec((bm, bn), lambda i, j: (i, j)),
        ),
        compiler_params=pltpu.CompilerParams(
            dimension_semantics=("parallel", "parallel"),
            vmem_limit_bytes=_VMEM_LIMIT_BYTES,
        ),
        cost_estimate=cost,
    )(x2, g2, b2)


# ---------------------------------------------------------------------------
# Public wrapper (matches FiLM2d.forward)
# ---------------------------------------------------------------------------

def film2d(x: jax.Array, gamma: jax.Array, beta: jax.Array) -> jax.Array:
    """FiLM2d forward: out[b,c,h,w] = gamma[b,c] * x[b,c,h,w] + beta[b,c].

    x:     (B, C, H, W)   (NCHW, same as the PyTorch module)
    gamma: (B, C)
    beta:  (B, C)
    """
    B, C, H, W = x.shape
    assert gamma.shape == (B, C) and beta.shape == (B, C)
    BC, HW = B * C, H * W

    # Compute in the input dtype (PyTorch broadcasts gamma/beta against input).
    g = gamma.astype(x.dtype).reshape(BC)
    b = beta.astype(x.dtype).reshape(BC)

    if HW >= 128:
        # Wide / 128-friendly lane axis: plain (B*C, H*W) view.
        out2 = _film_2d(x.reshape(BC, HW), g.reshape(BC, 1), b.reshape(BC, 1),
                        _film_rowwise_kernel, lane_split_ok=True,
                        tile_budget=_TILE_BUDGET_STANDARD)
        return out2.reshape(B, C, H, W)

    r = _pick_group(BC, HW)
    if r is not None:
        # Zero-copy row-grouping: r channels per row -> lane axis r*HW is a
        # dense multiple of 128 (no transposes, no masked partial stores).
        # Full rows always fit the budget here (r*HW <= 4096), so bn == N and
        # the in-kernel gamma/beta expansion lines up with whole rows.
        kernel = functools.partial(_film_grouped_kernel, hw=HW)
        out2 = _film_2d(x.reshape(BC // r, r * HW), g.reshape(BC // r, r),
                        b.reshape(BC // r, r), kernel, lane_split_ok=False,
                        tile_budget=_TILE_BUDGET_GROUPED)
        return out2.reshape(B, C, H, W)

    # No clean grouping (e.g. odd H*W with few channels): standard view with
    # masked sub-128-lane stores -- still far cheaper than materializing
    # transposed copies in HBM.
    out2 = _film_2d(x.reshape(BC, HW), g.reshape(BC, 1), b.reshape(BC, 1),
                    _film_rowwise_kernel, lane_split_ok=True,
                    tile_budget=_TILE_BUDGET_STANDARD)
    return out2.reshape(B, C, H, W)


if __name__ == "__main__":
    # FiLM2d has no learnable parameters; inputs are (input, gamma, beta).
    key = jax.random.PRNGKey(0)
    kx, kg, kb = jax.random.split(key, 3)

    def _check(shape):
        Bs, Cs, Hs, Ws = shape
        x = jax.random.normal(kx, shape, dtype=jnp.float32)
        gamma = jax.random.normal(kg, (Bs, Cs), dtype=jnp.float32)
        beta = jax.random.normal(kb, (Bs, Cs), dtype=jnp.float32)
        out = jax.block_until_ready(film2d(x, gamma, beta))
        ref = gamma[:, :, None, None] * x + beta[:, :, None, None]
        assert out.shape == x.shape
        assert jnp.allclose(out, ref, atol=1e-5, rtol=1e-5), f"mismatch for {shape}"

    _check((2, 4, 16, 16))   # wide lane path (H*W = 256, multiple of 128)
    _check((2, 64, 8, 8))    # grouped path   (H*W = 64  -> r = 2, lanes = 128)
    _check((2, 64, 7, 7))    # masked fallback (H*W = 49, no clean grouping)

    print("KERNEL_OK")
</pallas_src>

<mosaic_0001>
module attributes {stable_mosaic.version = 11 : i64} {
  func.func @_film_rowwise_kernel(%arg0: i32, %arg1: i32, %arg2: memref<8x256xf32, #tpu.memory_space<vmem>>, %arg3: memref<8x1xf32, #tpu.memory_space<vmem>>, %arg4: memref<8x1xf32, #tpu.memory_space<vmem>>, %arg5: memref<8x256xf32, #tpu.memory_space<vmem>>) attributes {dimension_semantics = [#tpu.dimension_semantics<parallel>, #tpu.dimension_semantics<parallel>], iteration_bounds = array<i64: 1, 1>, scalar_prefetch = 0 : i64, scratch_operands = 0 : i64, tpu.core_type = #tpu.core_type<tc>, window_params = [{transform_indices = @transform_0, window_bounds = array<i64: 8, 256>}, {transform_indices = @transform_1, window_bounds = array<i64: 8, 1>}, {transform_indices = @transform_2, window_bounds = array<i64: 8, 1>}, {transform_indices = @transform_3, window_bounds = array<i64: 8, 256>}]} {
    %c0 = arith.constant 0 : index
    %c0_0 = arith.constant 0 : index
    %0 = vector.load %arg3[%c0, %c0_0] : memref<8x1xf32, #tpu.memory_space<vmem>>, vector<8x1xf32>
    %c0_1 = arith.constant 0 : index
    %c0_2 = arith.constant 0 : index
    %1 = vector.load %arg2[%c0_1, %c0_2] : memref<8x256xf32, #tpu.memory_space<vmem>>, vector<8x256xf32>
    %2 = vector.broadcast %0 : vector<8x1xf32> to vector<8x256xf32>
    %3 = arith.mulf %2, %1 : vector<8x256xf32>
    %c0_3 = arith.constant 0 : index
    %c0_4 = arith.constant 0 : index
    %4 = vector.load %arg4[%c0_3, %c0_4] : memref<8x1xf32, #tpu.memory_space<vmem>>, vector<8x1xf32>
    %5 = vector.broadcast %4 : vector<8x1xf32> to vector<8x256xf32>
    %6 = arith.addf %3, %5 : vector<8x256xf32>
    %c0_5 = arith.constant 0 : index
    %c0_6 = arith.constant 0 : index
    %7 = vector.load %arg5[%c0_5, %c0_6] : memref<8x256xf32, #tpu.memory_space<vmem>>, vector<8x256xf32>
    tpu.vector_store %arg5[%c0_5, %c0_6], %6 {strides = array<i32>} : memref<8x256xf32, #tpu.memory_space<vmem>>, vector<8x256xf32>,
    return
  }
  func.func @transform_0(%arg0: i32, %arg1: i32) -> (i32, i32) {
    %c0_i32 = arith.constant 0 : i32
    return %arg0, %arg1 : i32, i32
  }
  func.func @transform_1(%arg0: i32, %arg1: i32) -> (i32, i32) {
    %c0_i32 = arith.constant 0 : i32
    %c0_i32_0 = arith.constant 0 : i32
    return %arg0, %c0_i32 : i32, i32
  }
  func.func @transform_2(%arg0: i32, %arg1: i32) -> (i32, i32) {
    %c0_i32 = arith.constant 0 : i32
    %c0_i32_0 = arith.constant 0 : i32
    return %arg0, %c0_i32 : i32, i32
  }
  func.func @transform_3(%arg0: i32, %arg1: i32) -> (i32, i32) {
    %c0_i32 = arith.constant 0 : i32
    return %arg0, %arg1 : i32, i32
  }
}

</mosaic_0001>

<bundles_post_ra>
// kernel: tpu_custom_call.1
= control target key start
LH: loop header
LB: loop body
LE: loop exit
PB: predicated region body
PF: predicated region fallthrough
CT: control target
= control target key end

     0   :  { %v76_v1 = vmov 0   ;;  %s122_s0 = inlined_call_operand.vmem [shape: f32[8,256], index: 0, kind: input, shape index: {}]   ;;  %s123_s1 = inlined_call_operand.vmem [shape: f32[8,1], index: 1, kind: input, shape index: {}]   ;;  %s124_s2 = inlined_call_operand.vmem [shape: f32[8,1], index: 2, kind: input, shape index: {}]   ;;  %s125_s3 = inlined_call_operand.hbm [shape: f32[8,256], index: 3, kind: output, shape index: {}]  }
   0x1   :  { %v15_v0 = vld [vmem:[%s123_s1] sm:$0xff]  ;;  %51 = vset.pattern.permute.xlu0 %v76_v1 }
   0x2   :  { %8 = vsyncpa [#allocation3], 0  ;;  %20 = vperm.xlu0 %51, %v15_v0   ;;  %v25_v2 = vld [vmem:[%s124_s2] sm:$0xff]  ;;  %v17_v4 = vld [vmem:[%s122_s0 + $0x8] sm:$0xff]  ;;  %s77_s20 = smov [#allocation2]  }
   0x3   :  { %v16_v3 = vld [vmem:[%s122_s0] sm:$0xff]  ;;  %s41_s1 = sshll.u32 %s77_s20, 4  ;;  %s42_s1 = int_to_ptr.vmem [resolvable:$true] %s41_s1 }
   0x4   :  { %s52_s2 = scalar_lea.vmem %s42_s1, 256  ;;  %p57_p1 = scmp.lt.s32.totalorder %s42_s1, %s42_s1 }
   0x5   :  { %p53_p0 = scmp.ne.s32.totalorder %s42_s1, %s52_s2  ;;  %p58_p2 = scmp.lt.s32.totalorder %s52_s2, %s52_s2 }
   0x6   :  { %28 = vperm.xlu0 %51, %v25_v2  }
   0x7   :  { %p59_p3 = por %p58_p2, %p57_p1 }
   0x9   :  { %p60_p4 = pnand %p59_p3, %p53_p0 }
  0x81   :  { %v21_v5 = vpop.permute.xlu0 %20 }
  0x82   :  { %v23_v6 = vmul.f32 %v21_v5, %v16_v3  ;;  %v24_v7 = vmul.f32 %v21_v5, %v17_v4 }
  0x85   :  { %v29_v8 = vpop.permute.xlu0 %28 }
  0x86   :  { %v31_v9 = vadd.f32 %v29_v8, %v23_v6  ;;  %v32_v10 = vadd.f32 %v29_v8, %v24_v7 }
  0x88   :  { %33 = vst [vmem:[#allocation2] sm:$0xff] %v31_v9  ;;  %34 = vst [vmem:[#allocation2 + $0x8] sm:$0xff] %v32_v10 }
  0x89   :  { %63 = shalt.err (!%p60_p4)
}
  0x8a   :  { %s64_s22 = scalar_lea.hbm %s125_s3, 256 }
  0x8b   :  { %p65_p5 = scmp.ne.s32.totalorder %s125_s3, %s64_s22  ;;  %p68_p6 = scmp.lt.u32.totalorder %s64_s22, %s125_s3 }
  0x8d   :  { %p70_p7 = pnand %p68_p6, %p65_p5 }
  0x8f   :  { %73 = shalt.err (!%p70_p7)
}
  0x90   :  { %44 = dma.vmem_to_hbm [thread:$0]  %s42_s1, 256, %s125_s3, [#allocation3]  }
  0x91   :  { %74 = dma.done.wait [#allocation3], 256  }
  0x92   :  { %75 = vsyncadd [#allocation3], 4294967040 }
  0x93   :  { %48 = vsyncpa [#allocation3], 1 }

</bundles_post_ra>
